<compile_context>
chip_gen: v5e
topology: v5e:2x2
jax: 0.10.0
libtpu: 0.0.40
codegen_flags: <defaults>
</compile_context>

<pallas_src>
import jax
import jax.numpy as jnp
from jax.experimental import pallas as pl
from jax.experimental.pallas import tpu as pltpu


_LANE = 128
# Portable VMEM budget for the pipelined tiles (works under v7x's 64 MiB
# physical / 32 MiB default-scoped VMEM, and under v5e's 16 MiB default).
_VMEM_TILE_BUDGET = 12 * 1024 * 1024
_MAX_SPATIAL_TILE = 32 * 1024


def _conv1x1_add_relu_kernel(x_ref, w_ref, b_ref, r_ref, o_ref):
    # x_ref: (bn, Cin, T)   input columns (spatial on lanes)
    # w_ref: (Cout, Cin)    1x1 conv weight (VMEM-resident, constant index_map)
    # b_ref: (Cout, 1)      bias (broadcast along lanes)
    # r_ref: (bn, Cout, T)  residual columns
    # o_ref: (bn, Cout, T)
    w = w_ref[...]
    b = b_ref[...]
    bn = x_ref.shape[0]                      # static block size
    for i in range(bn):                      # small, static trip count
        acc = jnp.dot(w, x_ref[i], preferred_element_type=jnp.float32)
        o_ref[i] = jnp.maximum(acc + b + r_ref[i], 0.0).astype(o_ref.dtype)


def _largest_divisor_leq(n, cap):
    cap = max(1, min(n, cap))
    for d in range(cap, 0, -1):
        if n % d == 0:
            return d
    return 1


def _choose_tiling(N, Cin, Cout, HW, dtype_bytes):
    """Pick (bn, thw, n_batch_blocks, n_spatial_blocks)."""
    rows = Cin + 2 * Cout                       # x + residual + out rows/column
    per_col = 2 * rows * dtype_bytes            # x2 for double buffering
    t_cap = (_VMEM_TILE_BUDGET // per_col) // _LANE * _LANE
    t_cap = max(_LANE, min(t_cap, _MAX_SPATIAL_TILE))

    if HW <= t_cap:
        # Whole spatial extent in one block (full-extent dim is exempt from the
        # 128 rule); pack several batch elements per step if budget allows.
        thw = HW
        bn_cap = max(1, _VMEM_TILE_BUDGET // (per_col * max(thw, 1)))
        bn = _largest_divisor_leq(N, bn_cap)
    else:
        # Fixed lane-dense tile + cdiv grid; Pallas masks the ragged last block.
        thw = t_cap
        bn = 1

    n_hw = pl.cdiv(HW, thw)
    n_b = N // bn

    # Megacore (v7x has 2 TensorCores): ensure >= 2 parallel grid steps.
    if n_b * n_hw < 2:
        if HW > _LANE:
            thw = pl.cdiv(pl.cdiv(HW, 2), _LANE) * _LANE
            n_hw = pl.cdiv(HW, thw)
        elif bn > 1:
            bn = _largest_divisor_leq(N, max(1, bn // 2))
            n_b = N // bn
    return bn, thw, n_b, n_hw


def conv1x1_add_relu(x1, x2, weight, bias):
    """x1, x2: (N, C, H, W) f32.  weight: (Cout, Cin, 1, 1).  bias: (Cout,)."""
    N, Cin, H, W = x1.shape
    Cout = weight.shape[0]
    HW = H * W

    # Zero-copy reshapes only — no transposes.
    x1_cm = x1.reshape(N, Cin, HW)
    x2_cm = x2.reshape(N, Cout, HW)
    w2d = weight.reshape(Cout, Cin)
    b2d = bias.reshape(Cout, 1)

    dtype_bytes = x1.dtype.itemsize
    bn, thw, n_b, n_hw = _choose_tiling(N, Cin, Cout, HW, dtype_bytes)

    # VMEM limit derived from actual block bytes (+ headroom), not a hardcoded
    # 64 MiB — keeps the kernel comfortably inside v7x's 64 MiB physical VMEM
    # while still raising v5e's 16 MiB default scoped limit when needed.
    blk_bytes = dtype_bytes * bn * thw * (Cin + 2 * Cout)
    param_bytes = dtype_bytes * (Cout * Cin + Cout)
    vmem_limit = min(max(2 * (blk_bytes + param_bytes) + (2 << 20), 8 << 20),
                     48 << 20)

    out_cm = pl.pallas_call(
        _conv1x1_add_relu_kernel,
        out_shape=jax.ShapeDtypeStruct((N, Cout, HW), x1.dtype),
        grid_spec=pltpu.PrefetchScalarGridSpec(
            num_scalar_prefetch=0,
            grid=(n_b, n_hw),
            in_specs=[
                # Input columns: bn batch elements per step, tiled spatial.
                pl.BlockSpec((bn, Cin, thw), lambda n, j: (n, 0, j)),
                # Weight / bias: tiny, VMEM-resident across the whole grid.
                pl.BlockSpec((Cout, Cin), lambda n, j: (0, 0)),
                pl.BlockSpec((Cout, 1), lambda n, j: (0, 0)),
                # Residual columns.
                pl.BlockSpec((bn, Cout, thw), lambda n, j: (n, 0, j)),
            ],
            out_specs=pl.BlockSpec((bn, Cout, thw), lambda n, j: (n, 0, j)),
        ),
        compiler_params=pltpu.CompilerParams(
            dimension_semantics=("parallel", "parallel"),
            vmem_limit_bytes=vmem_limit,
        ),
    )(x1_cm, w2d, b2d, x2_cm)

    return out_cm.reshape(N, Cout, H, W)   # zero-copy


def reference(x1, x2, weight, bias):
    # Pure-JAX reference of the PyTorch forward.
    w2d = weight.reshape(weight.shape[0], weight.shape[1])  # (Cout, Cin)
    v1 = jnp.einsum("nchw,oc->nohw", x1, w2d) + bias[None, :, None, None]
    return jnp.maximum(v1 + x2, 0.0)


if __name__ == "__main__":
    key = jax.random.PRNGKey(0)
    k1, k2, k3, k4 = jax.random.split(key, 4)

    # Shapes matching the module spec: Conv2d(16, 16, 1) on (1, 16, 64, 64).
    N, C, H, W = 1, 16, 64, 64
    x1 = jax.random.normal(k1, (N, C, H, W), dtype=jnp.float32)
    x2 = jax.random.normal(k2, (N, C, H, W), dtype=jnp.float32)

    # Deterministic PyTorch-style init (uniform bound 1/sqrt(fan_in)).
    bound = 1.0 / jnp.sqrt(jnp.float32(C * 1 * 1))
    weight = jax.random.uniform(k3, (C, C, 1, 1), jnp.float32, -bound, bound)
    bias = jax.random.uniform(k4, (C,), jnp.float32, -bound, bound)

    out = conv1x1_add_relu(x1, x2, weight, bias)
    out = jax.block_until_ready(out)

    ref = reference(x1, x2, weight, bias)
    assert out.shape == (N, C, H, W)
    assert jnp.allclose(out, ref, atol=1e-5, rtol=1e-5), "mismatch vs reference"

    print("KERNEL_OK")
</pallas_src>

<mosaic_0001>
module attributes {stable_mosaic.version = 11 : i64} {
  func.func @_conv1x1_add_relu_kernel(%arg0: i32, %arg1: i32, %arg2: memref<1x16x2048xf32, #tpu.memory_space<vmem>>, %arg3: memref<16x16xf32, #tpu.memory_space<vmem>>, %arg4: memref<16x1xf32, #tpu.memory_space<vmem>>, %arg5: memref<1x16x2048xf32, #tpu.memory_space<vmem>>, %arg6: memref<1x16x2048xf32, #tpu.memory_space<vmem>>) attributes {dimension_semantics = [#tpu.dimension_semantics<parallel>, #tpu.dimension_semantics<parallel>], iteration_bounds = array<i64: 1, 2>, scalar_prefetch = 0 : i64, scratch_operands = 0 : i64, tpu.core_type = #tpu.core_type<tc>, window_params = [{transform_indices = @transform_0, window_bounds = array<i64: 1, 16, 2048>}, {pipeline_mode = #tpu.pipeline_mode<synchronous>, transform_indices = @transform_1, window_bounds = array<i64: 16, 16>}, {pipeline_mode = #tpu.pipeline_mode<synchronous>, transform_indices = @transform_2, window_bounds = array<i64: 16, 1>}, {transform_indices = @transform_3, window_bounds = array<i64: 1, 16, 2048>}, {transform_indices = @transform_4, window_bounds = array<i64: 1, 16, 2048>}]} {
    %c0 = arith.constant 0 : index
    %c0_0 = arith.constant 0 : index
    %0 = vector.load %arg3[%c0, %c0_0] : memref<16x16xf32, #tpu.memory_space<vmem>>, vector<16x16xf32>
    %c0_1 = arith.constant 0 : index
    %c0_2 = arith.constant 0 : index
    %1 = vector.load %arg4[%c0_1, %c0_2] : memref<16x1xf32, #tpu.memory_space<vmem>>, vector<16x1xf32>
    %c0_3 = arith.constant 0 : index
    %c0_4 = arith.constant 0 : index
    %c0_5 = arith.constant 0 : index
    %2 = vector.load %arg2[%c0_3, %c0_4, %c0_5] : memref<1x16x2048xf32, #tpu.memory_space<vmem>>, vector<1x16x2048xf32>
    %3 = vector.shape_cast %2 : vector<1x16x2048xf32> to vector<16x2048xf32>
    %cst = arith.constant dense<0.000000e+00> : vector<16x2048xf32>
    %4 = tpu.matmul %0, %3, %cst {dimension_numbers = #tpu.dot_dimension_numbers<[1], [0], [0], [1], [0, 0, 1, 1], [], []>} : vector<16x16xf32>, vector<16x2048xf32>, vector<16x2048xf32> -> vector<16x2048xf32>
    %5 = vector.broadcast %1 : vector<16x1xf32> to vector<16x2048xf32>
    %6 = arith.addf %4, %5 : vector<16x2048xf32>
    %c0_6 = arith.constant 0 : index
    %c0_7 = arith.constant 0 : index
    %c0_8 = arith.constant 0 : index
    %7 = vector.load %arg5[%c0_6, %c0_7, %c0_8] : memref<1x16x2048xf32, #tpu.memory_space<vmem>>, vector<1x16x2048xf32>
    %8 = vector.shape_cast %7 : vector<1x16x2048xf32> to vector<16x2048xf32>
    %9 = arith.addf %6, %8 : vector<16x2048xf32>
    %cst_9 = arith.constant 0.000000e+00 : f32
    %10 = vector.broadcast %cst_9 : f32 to vector<16x2048xf32>
    %11 = arith.maximumf %9, %10 : vector<16x2048xf32>
    %c0_10 = arith.constant 0 : index
    %c0_11 = arith.constant 0 : index
    %c0_12 = arith.constant 0 : index
    %12 = vector.load %arg6[%c0_10, %c0_11, %c0_12] : memref<1x16x2048xf32, #tpu.memory_space<vmem>>, vector<1x16x2048xf32>
    %13 = vector.shape_cast %12 : vector<1x16x2048xf32> to vector<16x2048xf32>
    %14 = vector.shape_cast %11 : vector<16x2048xf32> to vector<1x16x2048xf32>
    tpu.vector_store %arg6[%c0_10, %c0_11, %c0_12], %14 {strides = array<i32>} : memref<1x16x2048xf32, #tpu.memory_space<vmem>>, vector<1x16x2048xf32>,
    return
  }
  func.func @transform_0(%arg0: i32, %arg1: i32) -> (i32, i32, i32) {
    %c0_i32 = arith.constant 0 : i32
    %c0_i32_0 = arith.constant 0 : i32
    return %arg0, %c0_i32, %arg1 : i32, i32, i32
  }
  func.func @transform_1(%arg0: i32, %arg1: i32) -> (i32, i32) {
    %c0_i32 = arith.constant 0 : i32
    %c0_i32_0 = arith.constant 0 : i32
    %c0_i32_1 = arith.constant 0 : i32
    return %c0_i32, %c0_i32_0 : i32, i32
  }
  func.func @transform_2(%arg0: i32, %arg1: i32) -> (i32, i32) {
    %c0_i32 = arith.constant 0 : i32
    %c0_i32_0 = arith.constant 0 : i32
    %c0_i32_1 = arith.constant 0 : i32
    return %c0_i32, %c0_i32_0 : i32, i32
  }
  func.func @transform_3(%arg0: i32, %arg1: i32) -> (i32, i32, i32) {
    %c0_i32 = arith.constant 0 : i32
    %c0_i32_0 = arith.constant 0 : i32
    return %arg0, %c0_i32, %arg1 : i32, i32, i32
  }
  func.func @transform_4(%arg0: i32, %arg1: i32) -> (i32, i32, i32) {
    %c0_i32 = arith.constant 0 : i32
    %c0_i32_0 = arith.constant 0 : i32
    return %arg0, %c0_i32, %arg1 : i32, i32, i32
  }
}

</mosaic_0001>

<bundles_post_ra>
// kernel: tpu_custom_call.1
= control target key start
LH: loop header
LB: loop body
LE: loop exit
PB: predicated region body
PF: predicated region fallthrough
CT: control target
= control target key end

     0   :  { %s1621_s0 = inlined_call_operand.hbm [shape: f32[1,16,4096], index: 0, kind: input, shape index: {}]   ;;  %s1622_s1 = inlined_call_operand.vmem [shape: f32[16,16], index: 1, kind: input, shape index: {}]   ;;  %s1623_s2 = inlined_call_operand.vmem [shape: f32[16,1], index: 2, kind: input, shape index: {}]   ;;  %s1624_s3 = inlined_call_operand.hbm [shape: f32[1,16,4096], index: 3, kind: input, shape index: {}]   ;;  %s1625_s4 = inlined_call_operand.hbm [shape: f32[1,16,4096], index: 4, kind: output, shape index: {}]  }
   0x1   :  { %1628 = sst [smem:[#allocation13_spill]] %s1621_s0 }
   0x2   :  { %9 = vsyncpa [#allocation3], 0 }
   0x3   :  { %11 = vsyncpa [#allocation3 + $0x1], 0 }
   0x4   :  { %12 = vsyncpa [#allocation6], 0 }
   0x5   :  { %14 = vsyncpa [#allocation6 + $0x1], 0 }
   0x6   :  { %15 = vsyncpa [#allocation4], 0 }
   0x7   :  { %17 = vsyncpa [#allocation4 + $0x1], 0  ;;  %s1274_s15 = smov 0   ;;  %s1276_s16 = smov 0  }
   0x8   :  { %s1278_s17 = smov 0   ;;  %s1280_s18 = smov 0  }
   0x9   :  { %s1282_s19 = smov 0   ;;  %s1284_s20 = smov 0  }
   0xa LB: > { %1629 = sst [smem:[#allocation11_spill]] %s1236_s19  ;;  %s965_s21 = sadd.s32 4294967295, %s1240_s20   ;;  %s1240_s20 = sphi %s1284_s20, %s23_s20   ;;  %s1236_s19 = sphi %s1282_s19, %s1638_s19   ;;  %s1232_s18 = sphi %s1280_s18, %s1637_s18   ;;  %s1228_s17 = sphi %s1278_s17, %s1641_s17   ;;  %s1224_s16 = sphi %s1276_s16, %s1640_s16   ;;  %s1220_s15 = sphi %s1274_s15, %s1639_s15  }
   0xb   : > { %s966_s22 = sadd.s32 4294967294, %s1240_s20   ;;  %s32_s23 = sadd.s32 1, %s1236_s19 }
   0xc   : > { %s44_s24 = sadd.s32 1, %s1228_s17  ;;  %p33_p0 = scmp.ge.s32.totalorder %s32_s23, 2 }
   0xd   : > { %p51_p1 = scmp.ne.s32.totalorder %s1228_s17, %s1224_s16  ;;  %p52_p2 = scmp.eq.s32.totalorder %s1240_s20, 0 }
   0xe   : > { %p57_p3 = scmp.ne.s32.totalorder %s1224_s16, %s1220_s15  ;;  %s1643_s23 = smov (%p33_p0, %s32_s23), 0 }
   0xf   : > { %1630 = sst [smem:[#allocation12_spill]] %s1643_s23  ;;  %p1315_p4 = por %p52_p2, %p51_p1 }
  0x10   : > { %p58_p5 = scmp.eq.s32.totalorder %s965_s21, 0  ;;  %s40_s26 = ssub.s32 %s1236_s19, %s1643_s23 }
  0x11   : > { %p153_p6 = scmp.eq.s32.totalorder %s965_s21, 1  ;;  %p42_p7 = scmp.eq.s32.totalorder %s40_s26, 0 }
  0x12   : > { %p1321_p8 = por %p58_p5, %p57_p3  ;;  %p159_p10 = scmp.eq.s32.totalorder %s966_s22, 1 }
  0x13   : > { %p1325_p9 = por %p153_p6, %p51_p1  ;;  %p968_p12 = scmp.ge.s32.totalorder %s1240_s20, 2 }
  0x14   : > { %s1330_s29 = scalar_select %p42_p7, %s1228_s17, %s44_s24  }
  0x15   : > { %p1332_p11 = por %p159_p10, %p57_p3  ;;  %p1036_p13 = scmp.lt.s32.totalorder %s1240_s20, 2 }
  0x16   : > { %s1339_s5 = sand.u32 1, %s1228_s17   ;;  %s1016_s7 = sshll.u32 %s1236_s19, 7 }
  0x17   : > { %s969_s6 = sshll.u32 %s1339_s5, 8  ;;  %s1635_s0 = sld [smem:[#allocation13_spill]] }
  0x18   : > { %s189_s11 = scalar_lea.vmem [#allocation2], %s969_s6  ;;  %p1348_p0 = pnand %p1036_p13, %p1315_p4 }
  0x19   : > { %s199_s12 = sshll.u32 %s189_s11, 4  ;;  %s186_s21 = scalar_lea.sflag [#allocation3], %s1339_s5  ;;  %s200_s12 = int_to_ptr.vmem [resolvable:$true] %s199_s12 }
  0x1a   : > { %s1242_s22 = smov 4096   ;;  %s1243_s24 = smov 2048  }
  0x1b   : > { %s1244_s26 = smov 128   ;;  %p975_p1 = scmp.ge.s32.totalorder %s1240_s20, 1 }
  0x1c   : > { %p231_p2 = scmp.lt.s32.totalorder %s1240_s20, 3  ;;  %s220_s25 = scalar_lea.hbm %s1624_s3, %s1016_s7 }
  0x1d   : > { %s196_s10 = scalar_lea.hbm %s1635_s0, %s1016_s7  ;;  %s213_s11 = scalar_lea.vmem [#allocation5], %s969_s6 }
  0x1e   : > { %s197_s13 = sshll.u32 %s196_s10, 4  ;;  %p232_p3 = pnand %p975_p1, %p231_p2  ;;  %s198_s13 = int_to_ptr.hbm [resolvable:$true] %s197_s13 }
  0x1f   : > { %1028 = dma.hbm_to_vmem [thread:$0]  (!%p1348_p0), %s198_s13, 4096, %s200_s12, %s186_s21, %s1242_s22, %s1243_s24, %s1244_s26  }
  0x20   : > { %s221_s10 = sshll.u32 %s220_s25, 4  ;;  %s223_s0 = sshll.u32 %s213_s11, 4  ;;  %s222_s10 = int_to_ptr.hbm [resolvable:$true] %s221_s10  ;;  %s224_s0 = int_to_ptr.vmem [resolvable:$true] %s223_s0 }
  0x21   : > { %s210_s23 = scalar_lea.sflag [#allocation6], %s1339_s5  ;;  %235 = sbr.rel (%p232_p3) target bundleno = 248 (0xf8), region = 36 }
  0x22   : > { %1031 = dma.hbm_to_vmem [thread:$0]  (!%p1348_p0), %s222_s10, 4096, %s224_s0, %s210_s23, %s1242_s22, %s1243_s24, %s1244_s26  }
  0x23   : > { %s1364_s19 = sand.u32 (!%p232_p3), 1, %s1224_s16  }
  0x24   : > { %s1367_s12 = sshll.u32 (!%p232_p3), %s1364_s19, 8  ;;  %s238_s13 = scalar_lea.sflag (!%p232_p3), [#allocation3], %s1364_s19 }
  0x25   : > { %s1371_s7 = scalar_lea.vmem (!%p232_p3), [#allocation2], %s1367_s12 }
  0x26   : > { %1207 = dma.done.wait (%p1321_p8), %s238_s13, 4096  }
  0x27   : > { %1209 = vsyncadd (%p1321_p8), %s238_s13, 4294963200  ;;  %s248_s0 = scalar_lea.sflag [#allocation6], %s1364_s19  ;;  %s1379_s23 = scalar_lea.vmem [#allocation5], %s1367_s12 }
  0x28   : > { %1211 = dma.done.wait (%p1321_p8), %s248_s0, 4096  }
  0x29   : > { %1213 = vsyncadd (%p1321_p8), %s248_s0, 4294963200  ;;  %v1245_v0 = vmov 0   ;;  %v305_v1 = vld [vmem:[%s1371_s7 + $0x80] sm:$0xff]  ;;  %v306_v2 = vld [vmem:[%s1371_s7 + $0x88] sm:$0xff]  ;;  %vm331_vm0 = vcmask 130048   ;;  %s1488_s8 = scalar_lea.vmem [#allocation7], %s1367_s12 }
  0x2a   : > { %1093 = vset.pattern.permute.xlu0 %v1245_v0  ;;  %v307_v3 = vld [vmem:[%s1371_s7 + $0x90] sm:$0xff]  ;;  %352 = vmatpush.msra.mxu0 %v305_v1  ;;  %v308_v4 = vld [vmem:[%s1371_s7 + $0x98] sm:$0xff]  ;;  %v289_v5 = vld [vmem:[%s1371_s7] sm:$0xff]  ;;  %s1018_s9 = sshll.u32 %s1232_s18, 7  ;;  %s849_s18 = sshll.u32 %s1488_s8, 4  ;;  %s850_s18 = int_to_ptr.vmem [resolvable:$true] %s849_s18 }
  0x2b   : > { %375 = vmatpush.msra.mxu1 %v306_v2  ;;  %v290_v6 = vld [vmem:[%s1371_s7 + $0x8] sm:$0xff]  ;;  %398 = vmatpush.msra.mxu2 %v307_v3  ;;  %v291_v7 = vld [vmem:[%s1371_s7 + $0x10] sm:$0xff]  ;;  %v292_v8 = vld [vmem:[%s1371_s7 + $0x18] sm:$0xff]  ;;  %s848_s11 = scalar_lea.hbm %s1625_s4, %s1018_s9  ;;  %s835_s13 = scalar_lea.sflag [#allocation4], %s1364_s19 }
  0x2c   : > { %421 = vmatpush.msra.mxu3 %v308_v4  ;;  %v1396_v9 = vld [vmem:[%s1622_s1] sm:$0xff]  ;;  %353 = vmatpush.msra.mxu0 %v289_v5  ;;  %v311_v10 = vld [vmem:[%s1371_s7 + $0xb0] sm:$0xff]  ;;  %v312_v11 = vld [vmem:[%s1371_s7 + $0xb8] sm:$0xff]  ;;  %s851_s12 = sshll.u32 %s848_s11, 4  ;;  %s1174_s5 = scalar_lea.hbm %s1625_s4, 512  ;;  %s852_s12 = int_to_ptr.hbm [resolvable:$true] %s851_s12 }
  0x2d   : > { %376 = vmatpush.msra.mxu1 %v290_v6  ;;  %399 = vmatpush.msra.mxu2 %v291_v7  ;;  %v309_v12 = vld [vmem:[%s1371_s7 + $0xa0] sm:$0xff]  ;;  %v310_v13 = vld [vmem:[%s1371_s7 + $0xa8] sm:$0xff]  ;;  %v295_v14 = vld [vmem:[%s1371_s7 + $0x30] sm:$0xff] }
  0x2e   : > { %422 = vmatpush.msra.mxu3 %v292_v8  ;;  %979 = vmatmul.msk.f32.vlgmr.msra.gmra.mxu0 %vm331_vm0, %v1396_v9  ;;  %v296_v15 = vld [vmem:[%s1371_s7 + $0x38] sm:$0xff]  ;;  %v293_v16 = vld [vmem:[%s1371_s7 + $0x20] sm:$0xff]  ;;  %v294_v17 = vld [vmem:[%s1371_s7 + $0x28] sm:$0xff] }
  0x2f   : > { %981 = vmatmul.msk.f32.vlgmr.msra.gmra.mxu1 %vm331_vm0, %v1396_v9  ;;  %983 = vmatmul.msk.f32.vlgmr.msra.gmra.mxu2 %vm331_vm0, %v1396_v9  ;;  %v315_v18 = vld [vmem:[%s1371_s7 + $0xd0] sm:$0xff]  ;;  %v316_v19 = vld [vmem:[%s1371_s7 + $0xd8] sm:$0xff]  ;;  %v287_v20 = vld [vmem:[%s1623_s2] sm:$0xff] }
  0x30   : > { %985 = vmatmul.msk.f32.vlgmr.msra.gmra.mxu3 %vm331_vm0, %v1396_v9  ;;  %490 = vmatpush.msrb.mxu2 %v311_v10  ;;  %v313_v21 = vld [vmem:[%s1371_s7 + $0xc0] sm:$0xff]  ;;  %v286_v22 = vld [vmem:[%s1622_s1 + $0x8] sm:$0xff]  ;;  %v299_v24 = vld [vmem:[%s1371_s7 + $0x50] sm:$0xff] }
  0x31   : > { %513 = vmatpush.msrb.mxu3 %v312_v11  ;;  %444 = vmatpush.msrb.mxu0 %v309_v12  ;;  %v314_v23 = vld [vmem:[%s1371_s7 + $0xc8] sm:$0xff]  ;;  %v300_v25 = vld [vmem:[%s1371_s7 + $0x58] sm:$0xff]  ;;  %v297_v26 = vld [vmem:[%s1371_s7 + $0x40] sm:$0xff] }
  0x32   : > { %467 = vmatpush.msrb.mxu1 %v310_v13  ;;  %491 = vmatpush.msrb.mxu2 %v295_v14  ;;  %v298_v27 = vld [vmem:[%s1371_s7 + $0x48] sm:$0xff]  ;;  %v319_v29 = vld [vmem:[%s1371_s7 + $0xf0] sm:$0xff]  ;;  %v320_v30 = vld [vmem:[%s1371_s7 + $0xf8] sm:$0xff] }
  0x33   : > { %514 = vmatpush.msrb.mxu3 %v296_v15  ;;  %445 = vmatpush.msrb.mxu0 %v293_v16  ;;  %v288_v28 = vld [vmem:[%s1623_s2 + $0x8] sm:$0xff]  ;;  %v317_v31 = vld [vmem:[%s1371_s7 + $0xe0] sm:$0xff]  ;;  %v303_v33 = vld [vmem:[%s1371_s7 + $0x70] sm:$0xff] }
  0x34   : > { %468 = vmatpush.msrb.mxu1 %v294_v17  ;;  %582 = vmatpush.msra.mxu2 %v315_v18  ;;  %v318_v32 = vld [vmem:[%s1371_s7 + $0xe8] sm:$0xff]  ;;  %v304_v34 = vld [vmem:[%s1371_s7 + $0x78] sm:$0xff]  ;;  %v301_v35 = vld [vmem:[%s1371_s7 + $0x60] sm:$0xff] }
  0x35   : > { %605 = vmatpush.msra.mxu3 %v316_v19  ;;  %323 = vperm.xlu0 %1093, %v287_v20   ;;  %v302_v36 = vld [vmem:[%s1371_s7 + $0x68] sm:$0xff]  ;;  %v706_v40 = vld [vmem:[%s1379_s23] sm:$0xff]  ;;  %v708_v50 = vld [vmem:[%s1379_s23 + $0x10] sm:$0xff]  ;;  %s1168_s7 = sshra.s32 %s852_s12, 4  ;;  %s1169_s7 = int_to_ptr.hbm [resolvable:$true] %s1168_s7 }
  0x36   : > { %536 = vmatpush.msra.mxu0 %v313_v21  ;;  %559 = vmatpush.msra.mxu1 %v314_v23  ;;  %v707_v41 = vld [vmem:[%s1379_s23 + $0x8] sm:$0xff]  ;;  %v709_v52 = vld [vmem:[%s1379_s23 + $0x18] sm:$0xff]  ;;  %v722_v57 = vld [vmem:[%s1379_s23 + $0x80] sm:$0xff]  ;;  %s1170_s0 = scalar_lea.hbm %s1169_s7, 256  ;;  %p1175_p7 = scmp.lt.s32.totalorder %s1169_s7, %s1625_s4 }
  0x37   : > { %980 = vmatmul.msk.f32.gmra.mxu0 %vm331_vm0, %v286_v22  ;;  %982 = vmatmul.msk.f32.gmra.mxu1 %vm331_vm0, %v286_v22  ;;  %v723_v58 = vld [vmem:[%s1379_s23 + $0x88] sm:$0xff]  ;;  %v724_v6 = vld [vmem:[%s1379_s23 + $0x90] sm:$0xff]  ;;  %v725_v8 = vld [vmem:[%s1379_s23 + $0x98] sm:$0xff]  ;;  %p1171_p4 = scmp.ne.s32.totalorder %s1169_s7, %s1170_s0  ;;  %p1176_p8 = scmp.lt.s32.totalorder %s1174_s5, %s1170_s0 }
  0x38   : > { %984 = vmatmul.msk.f32.gmra.mxu2 %vm331_vm0, %v286_v22  ;;  %986 = vmatmul.msk.f32.gmra.mxu3 %vm331_vm0, %v286_v22  ;;  %v710_v12 = vld [vmem:[%s1379_s23 + $0x20] sm:$0xff]  ;;  %v711_v14 = vld [vmem:[%s1379_s23 + $0x28] sm:$0xff] }
  0x39   : > { %583 = vmatpush.msra.mxu2 %v299_v24  ;;  %606 = vmatpush.msra.mxu3 %v300_v25  ;;  %p1172_p5 = pnand %p1171_p4, %p1325_p9  ;;  %p1177_p10 = por %p1176_p8, %p1175_p7 }
  0x3a   : > { %537 = vmatpush.msra.mxu0 %v297_v26  ;;  %560 = vmatpush.msra.mxu1 %v298_v27  ;;  %v712_v26 = vld [vmem:[%s1379_s23 + $0x30] sm:$0xff] }
  0x3b   : > { %p1173_p6 = pneg %p1172_p5 }
  0x3d   : > { %328 = vperm.xlu0 %1093, %v288_v28   ;;  %v713_v28 = vld [vmem:[%s1379_s23 + $0x38] sm:$0xff]  ;;  %p1178_p13 = pnand %p1177_p10, %p1173_p6 }
  0x3f   : > { %987 = vmatmul.msk.f32.vlgmr.msrb.gmra.mxu0 %vm331_vm0, %v1396_v9  ;;  %989 = vmatmul.msk.f32.vlgmr.msrb.gmra.mxu1 %vm331_vm0, %v1396_v9 }
  0x40   : > { %991 = vmatmul.msk.f32.vlgmr.msrb.gmra.mxu2 %vm331_vm0, %v1396_v9  ;;  %993 = vmatmul.msk.f32.vlgmr.msrb.gmra.mxu3 %vm331_vm0, %v1396_v9 }
  0x41   : > { %674 = vmatpush.msrb.mxu2 %v319_v29  ;;  %697 = vmatpush.msrb.mxu3 %v320_v30 }
  0x42   : > { %628 = vmatpush.msrb.mxu0 %v317_v31  ;;  %651 = vmatpush.msrb.mxu1 %v318_v32  ;;  %v726_v32 = vld [vmem:[%s1379_s23 + $0xa0] sm:$0xff] }
  0x43   : > { %675 = vmatpush.msrb.mxu2 %v303_v33  ;;  %698 = vmatpush.msrb.mxu3 %v304_v34  ;;  %v727_v34 = vld [vmem:[%s1379_s23 + $0xa8] sm:$0xff] }
  0x44   : > { %629 = vmatpush.msrb.mxu0 %v301_v35  ;;  %652 = vmatpush.msrb.mxu1 %v302_v36 }
  0x47   : > { %988 = vmatmul.msk.f32.gmra.mxu0 %vm331_vm0, %v286_v22  ;;  %990 = vmatmul.msk.f32.gmra.mxu1 %vm331_vm0, %v286_v22 }
  0x48   : > { %992 = vmatmul.msk.f32.gmra.mxu2 %vm331_vm0, %v286_v22  ;;  %994 = vmatmul.msk.f32.gmra.mxu3 %vm331_vm0, %v286_v22 }
  0x4f   : > { %995 = vmatmul.msk.f32.vlgmr.msra.gmra.mxu0 %vm331_vm0, %v1396_v9  ;;  %997 = vmatmul.msk.f32.vlgmr.msra.gmra.mxu1 %vm331_vm0, %v1396_v9 }
  0x50   : > { %999 = vmatmul.msk.f32.vlgmr.msra.gmra.mxu2 %vm331_vm0, %v1396_v9  ;;  %1001 = vmatmul.msk.f32.vlgmr.msra.gmra.mxu3 %vm331_vm0, %v1396_v9 }
  0x57   : > { %996 = vmatmul.msk.f32.gmra.mxu0 %vm331_vm0, %v286_v22  ;;  %998 = vmatmul.msk.f32.gmra.mxu1 %vm331_vm0, %v286_v22 }
  0x58   : > { %1000 = vmatmul.msk.f32.gmra.mxu2 %vm331_vm0, %v286_v22  ;;  %1002 = vmatmul.msk.f32.gmra.mxu3 %vm331_vm0, %v286_v22 }
  0x5f   : > { %1003 = vmatmul.msk.f32.vlgmr.msrb.gmra.mxu0 %vm331_vm0, %v1396_v9  ;;  %1005 = vmatmul.msk.f32.vlgmr.msrb.gmra.mxu1 %vm331_vm0, %v1396_v9 }
  0x60   : > { %1007 = vmatmul.msk.f32.vlgmr.msrb.gmra.mxu2 %vm331_vm0, %v1396_v9  ;;  %1009 = vmatmul.msk.f32.vlgmr.msrb.gmra.mxu3 %vm331_vm0, %v1396_v9 }
  0x67   : > { %1004 = vmatmul.msk.f32.gmra.mxu0 %vm331_vm0, %v286_v22  ;;  %1006 = vmatmul.msk.f32.gmra.mxu1 %vm331_vm0, %v286_v22 }
  0x68   : > { %1008 = vmatmul.msk.f32.gmra.mxu2 %vm331_vm0, %v286_v22  ;;  %1010 = vmatmul.msk.f32.gmra.mxu3 %vm331_vm0, %v286_v22 }
  0xa7   : > { %v1479_v37 = vpop.permute.xlu0 %323 }
  0xab   : > { %v355_v38 = vpop.f32.mrf.mxu0 }
  0xac   : > { %v378_v39 = vpop.f32.mrf.mxu1  ;;  %v356_v42 = vadd.f32 %v355_v38, %v1479_v37 }
  0xad   : > { %v379_v43 = vadd.f32 %v378_v39, %v1479_v37 }
  0xae   : > { %v738_v44 = vadd.f32 %v706_v40, %v356_v42 }
  0xaf   : > { %v739_v45 = vadd.f32 %v707_v41, %v379_v43  ;;  %v1485_v48 = vpop.permute.xlu0 %328 }
  0xb0   : > { %v770_v46 = vmax.f32 %v738_v44, 0.0 }
  0xb1   : > { %v771_v47 = vmax.f32 %v739_v45, 0.0 }
  0xb2   : > { %802 = vst [vmem:[%s1488_s8] sm:$0xff] %v770_v46  ;;  %v401_v49 = vpop.f32.mrf.mxu2 }
  0xb3   : > { %v424_v51 = vpop.f32.mrf.mxu3  ;;  %803 = vst [vmem:[%s1488_s8 + $0x8] sm:$0xff] %v771_v47  ;;  %v402_v53 = vadd.f32 %v401_v49, %v1479_v37  ;;  %v728_v47 = vld [vmem:[%s1379_s23 + $0xb0] sm:$0xff] }
  0xb4   : > { %v425_v54 = vadd.f32 %v424_v51, %v1479_v37  ;;  %v358_v55 = vpop.f32.mrf.mxu0  ;;  %v381_v56 = vpop.f32.mrf.mxu1 }
  0xb5   : > { %v359_v59 = vadd.f32 %v358_v55, %v1485_v48  ;;  %v382_v60 = vadd.f32 %v381_v56, %v1485_v48  ;;  %v740_v61 = vadd.f32 %v708_v50, %v402_v53  ;;  %v729_v50 = vld [vmem:[%s1379_s23 + $0xb8] sm:$0xff]  ;;  %v715_v56 = vld [vmem:[%s1379_s23 + $0x48] sm:$0xff] }
  0xb6   : > { %v741_v62 = vadd.f32 %v709_v52, %v425_v54  ;;  %v714_v54 = vld [vmem:[%s1379_s23 + $0x40] sm:$0xff] }
  0xb7   : > { %v754_v63 = vadd.f32 %v722_v57, %v359_v59  ;;  %v755_v0 = vadd.f32 %v723_v58, %v382_v60  ;;  %v772_v1 = vmax.f32 %v740_v61, 0.0 }
  0xb8   : > { %v773_v2 = vmax.f32 %v741_v62, 0.0 }
  0xb9   : > { %v786_v3 = vmax.f32 %v754_v63, 0.0  ;;  %v787_v4 = vmax.f32 %v755_v0, 0.0  ;;  %804 = vst [vmem:[%s1488_s8 + $0x10] sm:$0xff] %v772_v1 }
  0xba   : > { %805 = vst [vmem:[%s1488_s8 + $0x18] sm:$0xff] %v773_v2 }
  0xbb   : > { %v404_v5 = vpop.f32.mrf.mxu2  ;;  %v427_v7 = vpop.f32.mrf.mxu3  ;;  %818 = vst [vmem:[%s1488_s8 + $0x80] sm:$0xff] %v786_v3 }
  0xbc   : > { %v405_v9 = vadd.f32 %v404_v5, %v1485_v48  ;;  %v428_v10 = vadd.f32 %v427_v7, %v1485_v48  ;;  %v447_v11 = vpop.f32.mrf.mxu0  ;;  %v470_v13 = vpop.f32.mrf.mxu1  ;;  %819 = vst [vmem:[%s1488_s8 + $0x88] sm:$0xff] %v787_v4  ;;  %v716_v4 = vld [vmem:[%s1379_s23 + $0x50] sm:$0xff] }
  0xbd   : > { %v448_v15 = vadd.f32 %v447_v11, %v1479_v37  ;;  %v471_v16 = vadd.f32 %v470_v13, %v1479_v37 }
  0xbe   : > { %v756_v17 = vadd.f32 %v724_v6, %v405_v9  ;;  %v757_v18 = vadd.f32 %v725_v8, %v428_v10  ;;  %v717_v6 = vld [vmem:[%s1379_s23 + $0x58] sm:$0xff]  ;;  %v730_v10 = vld [vmem:[%s1379_s23 + $0xc0] sm:$0xff] }
  0xbf   : > { %v742_v19 = vadd.f32 %v710_v12, %v448_v15  ;;  %v743_v20 = vadd.f32 %v711_v14, %v471_v16  ;;  %v731_v12 = vld [vmem:[%s1379_s23 + $0xc8] sm:$0xff] }
  0xc0   : > { %v788_v21 = vmax.f32 %v756_v17, 0.0  ;;  %v789_v22 = vmax.f32 %v757_v18, 0.0 }
  0xc1   : > { %v774_v23 = vmax.f32 %v742_v19, 0.0  ;;  %v775_v24 = vmax.f32 %v743_v20, 0.0 }
  0xc2   : > { %820 = vst [vmem:[%s1488_s8 + $0x90] sm:$0xff] %v788_v21 }
  0xc3   : > { %821 = vst [vmem:[%s1488_s8 + $0x98] sm:$0xff] %v789_v22  ;;  %v493_v25 = vpop.f32.mrf.mxu2  ;;  %v516_v27 = vpop.f32.mrf.mxu3 }
  0xc4   : > { %806 = vst [vmem:[%s1488_s8 + $0x20] sm:$0xff] %v774_v23  ;;  %v494_v29 = vadd.f32 %v493_v25, %v1479_v37  ;;  %v517_v30 = vadd.f32 %v516_v27, %v1479_v37  ;;  %v450_v31 = vpop.f32.mrf.mxu0  ;;  %v473_v33 = vpop.f32.mrf.mxu1 }
  0xc5   : > { %807 = vst [vmem:[%s1488_s8 + $0x28] sm:$0xff] %v775_v24  ;;  %v451_v35 = vadd.f32 %v450_v31, %v1485_v48  ;;  %v474_v36 = vadd.f32 %v473_v33, %v1485_v48  ;;  %v732_v24 = vld [vmem:[%s1379_s23 + $0xd0] sm:$0xff] }
  0xc6   : > { %v744_v38 = vadd.f32 %v712_v26, %v494_v29  ;;  %v745_v39 = vadd.f32 %v713_v28, %v517_v30  ;;  %v733_v26 = vld [vmem:[%s1379_s23 + $0xd8] sm:$0xff]  ;;  %v718_v30 = vld [vmem:[%s1379_s23 + $0x60] sm:$0xff] }
  0xc7   : > { %v758_v40 = vadd.f32 %v726_v32, %v451_v35  ;;  %v759_v41 = vadd.f32 %v727_v34, %v474_v36  ;;  %v719_v32 = vld [vmem:[%s1379_s23 + $0x68] sm:$0xff] }
  0xc8   : > { %v776_v42 = vmax.f32 %v744_v38, 0.0  ;;  %v777_v43 = vmax.f32 %v745_v39, 0.0 }
  0xc9   : > { %v790_v44 = vmax.f32 %v758_v40, 0.0  ;;  %v791_v45 = vmax.f32 %v759_v41, 0.0 }
  0xca   : > { %808 = vst [vmem:[%s1488_s8 + $0x30] sm:$0xff] %v776_v42 }
  0xcb   : > { %809 = vst [vmem:[%s1488_s8 + $0x38] sm:$0xff] %v777_v43  ;;  %v496_v46 = vpop.f32.mrf.mxu2  ;;  %v519_v49 = vpop.f32.mrf.mxu3 }
  0xcc   : > { %822 = vst [vmem:[%s1488_s8 + $0xa0] sm:$0xff] %v790_v44  ;;  %v497_v51 = vadd.f32 %v496_v46, %v1485_v48  ;;  %v520_v52 = vadd.f32 %v519_v49, %v1485_v48  ;;  %v539_v53 = vpop.f32.mrf.mxu0  ;;  %v562_v55 = vpop.f32.mrf.mxu1 }
  0xcd   : > { %823 = vst [vmem:[%s1488_s8 + $0xa8] sm:$0xff] %v791_v45  ;;  %v540_v57 = vadd.f32 %v539_v53, %v1479_v37  ;;  %v563_v58 = vadd.f32 %v562_v55, %v1479_v37  ;;  %v720_v45 = vld [vmem:[%s1379_s23 + $0x70] sm:$0xff] }
  0xce   : > { %v760_v59 = vadd.f32 %v728_v47, %v497_v51  ;;  %v761_v60 = vadd.f32 %v729_v50, %v520_v52  ;;  %v721_v47 = vld [vmem:[%s1379_s23 + $0x78] sm:$0xff]  ;;  %v734_v52 = vld [vmem:[%s1379_s23 + $0xe0] sm:$0xff] }
  0xcf   : > { %v746_v61 = vadd.f32 %v714_v54, %v540_v57  ;;  %v747_v62 = vadd.f32 %v715_v56, %v563_v58  ;;  %v735_v54 = vld [vmem:[%s1379_s23 + $0xe8] sm:$0xff] }
  0xd0   : > { %v792_v63 = vmax.f32 %v760_v59, 0.0  ;;  %v793_v0 = vmax.f32 %v761_v60, 0.0 }
  0xd1   : > { %v778_v1 = vmax.f32 %v746_v61, 0.0  ;;  %v779_v2 = vmax.f32 %v747_v62, 0.0 }
  0xd2   : > { %824 = vst [vmem:[%s1488_s8 + $0xb0] sm:$0xff] %v792_v63 }
  0xd3   : > { %825 = vst [vmem:[%s1488_s8 + $0xb8] sm:$0xff] %v793_v0  ;;  %v585_v3 = vpop.f32.mrf.mxu2  ;;  %v608_v5 = vpop.f32.mrf.mxu3 }
  0xd4   : > { %810 = vst [vmem:[%s1488_s8 + $0x40] sm:$0xff] %v778_v1  ;;  %v586_v7 = vadd.f32 %v585_v3, %v1479_v37  ;;  %v609_v8 = vadd.f32 %v608_v5, %v1479_v37  ;;  %v542_v9 = vpop.f32.mrf.mxu0  ;;  %v565_v11 = vpop.f32.mrf.mxu1  ;;  %v736_v1 = vld [vmem:[%s1379_s23 + $0xf0] sm:$0xff]  ;;  %v737_v3 = vld [vmem:[%s1379_s23 + $0xf8] sm:$0xff] }
  0xd5   : > { %811 = vst [vmem:[%s1488_s8 + $0x48] sm:$0xff] %v779_v2  ;;  %v543_v13 = vadd.f32 %v542_v9, %v1485_v48  ;;  %v566_v14 = vadd.f32 %v565_v11, %v1485_v48 }
  0xd6   : > { %v748_v15 = vadd.f32 %v716_v4, %v586_v7  ;;  %v749_v16 = vadd.f32 %v717_v6, %v609_v8 }
  0xd7   : > { %v762_v17 = vadd.f32 %v730_v10, %v543_v13  ;;  %v763_v18 = vadd.f32 %v731_v12, %v566_v14 }
  0xd8   : > { %v780_v19 = vmax.f32 %v748_v15, 0.0  ;;  %v781_v20 = vmax.f32 %v749_v16, 0.0 }
  0xd9   : > { %v794_v21 = vmax.f32 %v762_v17, 0.0  ;;  %v795_v22 = vmax.f32 %v763_v18, 0.0 }
  0xda   : > { %812 = vst [vmem:[%s1488_s8 + $0x50] sm:$0xff] %v780_v19 }
  0xdb   : > { %813 = vst [vmem:[%s1488_s8 + $0x58] sm:$0xff] %v781_v20  ;;  %v588_v23 = vpop.f32.mrf.mxu2  ;;  %v611_v25 = vpop.f32.mrf.mxu3 }
  0xdc   : > { %826 = vst [vmem:[%s1488_s8 + $0xc0] sm:$0xff] %v794_v21  ;;  %v589_v27 = vadd.f32 %v588_v23, %v1485_v48  ;;  %v612_v28 = vadd.f32 %v611_v25, %v1485_v48  ;;  %v631_v29 = vpop.f32.mrf.mxu0  ;;  %v654_v31 = vpop.f32.mrf.mxu1 }
  0xdd   : > { %827 = vst [vmem:[%s1488_s8 + $0xc8] sm:$0xff] %v795_v22  ;;  %v632_v33 = vadd.f32 %v631_v29, %v1479_v37  ;;  %v655_v34 = vadd.f32 %v654_v31, %v1479_v37 }
  0xde   : > { %v764_v35 = vadd.f32 %v732_v24, %v589_v27  ;;  %v765_v36 = vadd.f32 %v733_v26, %v612_v28 }
  0xdf   : > { %v750_v38 = vadd.f32 %v718_v30, %v632_v33  ;;  %v751_v39 = vadd.f32 %v719_v32, %v655_v34 }
  0xe0   : > { %v796_v40 = vmax.f32 %v764_v35, 0.0  ;;  %v797_v41 = vmax.f32 %v765_v36, 0.0 }
  0xe1   : > { %v782_v42 = vmax.f32 %v750_v38, 0.0  ;;  %v783_v43 = vmax.f32 %v751_v39, 0.0 }
  0xe2   : > { %828 = vst [vmem:[%s1488_s8 + $0xd0] sm:$0xff] %v796_v40 }
  0xe3   : > { %829 = vst [vmem:[%s1488_s8 + $0xd8] sm:$0xff] %v797_v41  ;;  %v677_v44 = vpop.f32.mrf.mxu2  ;;  %v700_v46 = vpop.f32.mrf.mxu3 }
  0xe4   : > { %814 = vst [vmem:[%s1488_s8 + $0x60] sm:$0xff] %v782_v42  ;;  %v678_v49 = vadd.f32 %v677_v44, %v1479_v37  ;;  %v701_v50 = vadd.f32 %v700_v46, %v1479_v37  ;;  %v634_v51 = vpop.f32.mrf.mxu0  ;;  %v657_v53 = vpop.f32.mrf.mxu1 }
  0xe5   : > { %815 = vst [vmem:[%s1488_s8 + $0x68] sm:$0xff] %v783_v43  ;;  %v635_v55 = vadd.f32 %v634_v51, %v1485_v48  ;;  %v658_v56 = vadd.f32 %v657_v53, %v1485_v48 }
  0xe6   : > { %v752_v57 = vadd.f32 %v720_v45, %v678_v49  ;;  %v753_v58 = vadd.f32 %v721_v47, %v701_v50 }
  0xe7   : > { %v766_v59 = vadd.f32 %v734_v52, %v635_v55  ;;  %v767_v60 = vadd.f32 %v735_v54, %v658_v56 }
  0xe8   : > { %v784_v37 = vmax.f32 %v752_v57, 0.0  ;;  %v785_v61 = vmax.f32 %v753_v58, 0.0 }
  0xe9   : > { %v798_v62 = vmax.f32 %v766_v59, 0.0  ;;  %v799_v63 = vmax.f32 %v767_v60, 0.0 }
  0xea   : > { %816 = vst [vmem:[%s1488_s8 + $0x70] sm:$0xff] %v784_v37 }
  0xeb   : > { %817 = vst [vmem:[%s1488_s8 + $0x78] sm:$0xff] %v785_v61  ;;  %v680_v0 = vpop.f32.mrf.mxu2  ;;  %v703_v2 = vpop.f32.mrf.mxu3 }
  0xec   : > { %830 = vst [vmem:[%s1488_s8 + $0xe0] sm:$0xff] %v798_v62  ;;  %v681_v4 = vadd.f32 %v680_v0, %v1485_v48  ;;  %v704_v5 = vadd.f32 %v703_v2, %v1485_v48 }
  0xed   : > { %831 = vst [vmem:[%s1488_s8 + $0xe8] sm:$0xff] %v799_v63 }
  0xee   : > { %v768_v6 = vadd.f32 %v736_v1, %v681_v4  ;;  %v769_v7 = vadd.f32 %v737_v3, %v704_v5 }
  0xf0   : > { %v800_v8 = vmax.f32 %v768_v6, 0.0  ;;  %v801_v9 = vmax.f32 %v769_v7, 0.0 }
  0xf2   : > { %832 = vst [vmem:[%s1488_s8 + $0xf0] sm:$0xff] %v800_v8 }
  0xf3   : > { %833 = vst [vmem:[%s1488_s8 + $0xf8] sm:$0xff] %v801_v9 }
  0xf4   : > { %1181 = shalt.err (!%p1178_p13)
}
  0xf5   : > { %s1246_s19 = smov 2048   ;;  %s1247_s21 = smov 4096  }
  0xf6   : > { %s1248_s22 = smov 128  }
  0xf7   : > { %1023 = dma.vmem_to_hbm [thread:$0]  (%p1325_p9), %s850_s18, 4096, %s852_s12, %s835_s13, %s1246_s19, %s1247_s21, %s1248_s22  }
  0xf8 PF: > { %s866_s24 = sand.u32 1, %s1220_s15   ;;  %p1033_p0 = pnand %p968_p12, %p1332_p11 }
  0xf9   : > { %s867_s26 = scalar_lea.sflag [#allocation4], %s866_s24 }
  0xfa   : > { %p1034_p1 = pneg %p1033_p0 }
  0xfc   : > { %1215 = dma.done.wait (%p1034_p1), %s867_s26, 4096  }
  0xfd   : > { %1217 = vsyncadd (%p1034_p1), %s867_s26, 4294963200  ;;  %s23_s20 = sadd.s32 1, %s1240_s20   ;;  %s1637_s18 = sld [smem:[#allocation11_spill]] }
  0xfe   : > { %p20_p2 = scmp.ge.s32.totalorder %s23_s20, 4   ;;  %s1638_s19 = sld [smem:[#allocation12_spill]] }
  0xff   : > { %s1639_s15 = smov %s1224_s16  ;;  %s1640_s16 = smov %s1228_s17 }
 0x100   : > { %s1641_s17 = smov %s1330_s29  ;;  %22 = sbr.rel (!%p20_p2) target bundleno = 10 (0xa), region = 94 }
 0x105   :  { %873 = vsyncpa [#allocation3], 1 }
 0x106   :  { %875 = vsyncpa [#allocation3 + $0x1], 1 }
 0x107   :  { %876 = vsyncpa [#allocation6], 1 }
 0x108   :  { %878 = vsyncpa [#allocation6 + $0x1], 1 }
 0x109   :  { %879 = vsyncpa [#allocation4], 1 }
 0x10a   :  { %881 = vsyncpa [#allocation4 + $0x1], 1 }

</bundles_post_ra>
